<compile_context>
chip_gen: v5e
topology: v5e:2x2
jax: 0.10.0
libtpu: 0.0.40
codegen_flags: <defaults>
</compile_context>

<pallas_src>
import functools

import jax
import jax.numpy as jnp
from jax.experimental import pallas as pl
from jax.experimental.pallas import tpu as pltpu

_EPS = 1e-8
_LANES = 128
_SUBLANES = 8


def _contrastive_loss_kernel(x1_ref, x2_ref, label_ref, out_ref, *,
                             margin, true_b, tile_b):
    x1 = x1_ref[...].astype(jnp.float32)          # (TILE_B, D_pad)
    x2 = x2_ref[...].astype(jnp.float32)          # (TILE_B, D_pad)
    lab = label_ref[...].astype(jnp.float32)      # (TILE_B, 1)

    # Cosine similarity along the feature (lane) axis.
    # NOTE: dot products stay on VPU multiply + XLU row-reduce (only the
    # "diagonal" is needed; an MXU formulation would be pure waste).
    dot = jnp.sum(x1 * x2, axis=-1, keepdims=True)      # (TILE_B, 1)
    s1 = jnp.sum(x1 * x1, axis=-1, keepdims=True)       # ||x1||^2
    s2 = jnp.sum(x2 * x2, axis=-1, keepdims=True)       # ||x2||^2
    # dot / max(sqrt(s1*s2), eps) == dot * rsqrt(max(s1*s2, eps^2))  (EUP)
    cos = dot * jax.lax.rsqrt(jnp.maximum(s1 * s2, _EPS * _EPS))

    d = 1.0 - cos                                        # euclidean_distance
    pos = (1.0 - lab) * d * d
    hinge = jnp.maximum(margin - d, 0.0)
    neg = 3.0 * lab * hinge * hinge
    per_row = pos + neg                                  # (TILE_B, 1)

    # Mask padded batch rows so they do not bias the mean.
    row = (pl.program_id(0) * tile_b
           + jax.lax.broadcasted_iota(jnp.int32, (tile_b, 1), 0))
    per_row = jnp.where(row < true_b, per_row, 0.0)

    partial = jnp.sum(per_row)                           # scalar tile sum
    # Lane-dense (8,128) output block: unmasked vst, independent per tile.
    out_ref[...] = jnp.broadcast_to(partial, out_ref.shape).astype(jnp.float32)


def _round_up(x, m):
    return (x + m - 1) // m * m


def _pick_tile_b(d_pad, itemsize):
    """Rows/tile: keep 2 inputs x 2 pipeline buffers well inside VMEM."""
    try:
        vmem_bytes = int(pltpu.get_tpu_info().vmem_capacity_bytes)
    except Exception:
        vmem_bytes = 64 * 1024 * 1024            # assume smallest (v7x per-TC)
    budget = vmem_bytes // 4                     # headroom for out/scratch
    rows = budget // (4 * d_pad * itemsize)      # 2 inputs * 2 buffers
    # Keep each input tile in the ~1-4 MiB DMA sweet spot.
    rows = min(rows, (4 * 1024 * 1024) // (d_pad * itemsize))
    rows = max(_SUBLANES, (rows // _SUBLANES) * _SUBLANES)
    return int(rows)


def contrastive_loss(output1, output2, label, margin=1.0, tile_b=None):
    """output1, output2: (B, D); label: (B,) -> scalar loss (float32)."""
    B, D = output1.shape
    itemsize = jnp.dtype(output1.dtype).itemsize

    # Lane-dense feature dim (zero padding is exact for dot / norms).
    d_pad = _round_up(D, _LANES)
    if d_pad != D:
        output1 = jnp.pad(output1, ((0, 0), (0, d_pad - D)))
        output2 = jnp.pad(output2, ((0, 0), (0, d_pad - D)))

    if tile_b is None:
        tile_b = _pick_tile_b(d_pad, itemsize)
    tile_b = _round_up(int(tile_b), _SUBLANES)
    tile_b = min(tile_b, _round_up(B, _SUBLANES))

    b_pad = _round_up(B, tile_b)
    if b_pad != B:
        output1 = jnp.pad(output1, ((0, b_pad - B), (0, 0)))
        output2 = jnp.pad(output2, ((0, b_pad - B), (0, 0)))

    label2d = label.reshape(B, 1).astype(jnp.float32)
    if b_pad != B:
        label2d = jnp.pad(label2d, ((0, b_pad - B), (0, 0)))

    num_tiles = b_pad // tile_b

    kernel = functools.partial(_contrastive_loss_kernel,
                               margin=float(margin), true_b=B, tile_b=tile_b)

    tile_bytes = tile_b * d_pad * itemsize
    vmem_limit = int(min(32 * 1024 * 1024,
                         max(16 * 1024 * 1024, 6 * tile_bytes + (1 << 20))))

    partial_sums = pl.pallas_call(
        kernel,
        out_shape=jax.ShapeDtypeStruct((num_tiles * _SUBLANES, _LANES),
                                       jnp.float32),
        grid=(num_tiles,),
        in_specs=[
            pl.BlockSpec((tile_b, d_pad), lambda i: (i, 0)),
            pl.BlockSpec((tile_b, d_pad), lambda i: (i, 0)),
            pl.BlockSpec((tile_b, 1), lambda i: (i, 0)),
        ],
        out_specs=pl.BlockSpec((_SUBLANES, _LANES), lambda i: (i, 0)),
        compiler_params=pltpu.CompilerParams(
            dimension_semantics=("parallel",),
            vmem_limit_bytes=vmem_limit,
        ),
    )(output1, output2, label2d)

    # One partial sum per tile, replicated inside its (8,128) block.
    total = jnp.sum(partial_sums[::_SUBLANES, 0])
    return total / jnp.float32(B)


def _reference(output1, output2, label, margin=1.0):
    x1 = output1.astype(jnp.float32)
    x2 = output2.astype(jnp.float32)
    dot = jnp.sum(x1 * x2, axis=1)
    n1 = jnp.sqrt(jnp.sum(x1 * x1, axis=1))
    n2 = jnp.sqrt(jnp.sum(x2 * x2, axis=1))
    cos = dot / jnp.maximum(n1 * n2, _EPS)
    d = 1.0 - cos
    lab = label.astype(jnp.float32)
    return jnp.mean((1.0 - lab) * d * d
                    + 3.0 * lab * jnp.square(jnp.maximum(margin - d, 0.0)))


if __name__ == "__main__":
    key = jax.random.PRNGKey(0)
    k1, k2, k3, k4, k5, k6 = jax.random.split(key, 6)

    # Case 1: small, un-aligned shapes (exercise D and B padding + masking).
    B, D = 6, 32
    o1 = jax.random.normal(k1, (B, D), dtype=jnp.float32)
    o2 = jax.random.normal(k2, (B, D), dtype=jnp.float32)
    lab = jax.random.bernoulli(k3, 0.5, (B,)).astype(jnp.float32)

    loss = jax.block_until_ready(contrastive_loss(o1, o2, lab, margin=1.0))
    ref = _reference(o1, o2, lab, margin=1.0)
    assert jnp.allclose(loss, ref, atol=1e-5, rtol=1e-4), (loss, ref)

    # Case 2: force a small tile -> multi-tile grid, "parallel" axis, masking.
    B2, D2 = 20, 32
    o1b = jax.random.normal(k4, (B2, D2), dtype=jnp.float32)
    o2b = jax.random.normal(k5, (B2, D2), dtype=jnp.float32)
    lab2 = jax.random.bernoulli(k6, 0.5, (B2,)).astype(jnp.float32)

    loss2 = jax.block_until_ready(
        contrastive_loss(o1b, o2b, lab2, margin=1.0, tile_b=8))
    ref2 = _reference(o1b, o2b, lab2, margin=1.0)
    assert jnp.allclose(loss2, ref2, atol=1e-5, rtol=1e-4), (loss2, ref2)

    print("KERNEL_OK")
</pallas_src>

<mosaic_0001>
module attributes {stable_mosaic.version = 11 : i64} {
  func.func @_contrastive_loss_kernel(%arg0: i32, %arg1: memref<8x128xf32, #tpu.memory_space<vmem>>, %arg2: memref<8x128xf32, #tpu.memory_space<vmem>>, %arg3: memref<8x1xf32, #tpu.memory_space<vmem>>, %arg4: memref<8x128xf32, #tpu.memory_space<vmem>>) attributes {dimension_semantics = [#tpu.dimension_semantics<parallel>], iteration_bounds = array<i64: 1>, scalar_prefetch = 0 : i64, scratch_operands = 0 : i64, tpu.core_type = #tpu.core_type<tc>, window_params = [{transform_indices = @transform_0, window_bounds = array<i64: 8, 128>}, {transform_indices = @transform_1, window_bounds = array<i64: 8, 128>}, {transform_indices = @transform_2, window_bounds = array<i64: 8, 1>}, {transform_indices = @transform_3, window_bounds = array<i64: 8, 128>}]} {
    %c0 = arith.constant 0 : index
    %c0_0 = arith.constant 0 : index
    %0 = vector.load %arg1[%c0, %c0_0] : memref<8x128xf32, #tpu.memory_space<vmem>>, vector<8x128xf32>
    %c0_1 = arith.constant 0 : index
    %c0_2 = arith.constant 0 : index
    %1 = vector.load %arg2[%c0_1, %c0_2] : memref<8x128xf32, #tpu.memory_space<vmem>>, vector<8x128xf32>
    %c0_3 = arith.constant 0 : index
    %c0_4 = arith.constant 0 : index
    %2 = vector.load %arg3[%c0_3, %c0_4] : memref<8x1xf32, #tpu.memory_space<vmem>>, vector<8x1xf32>
    %3 = arith.mulf %0, %1 : vector<8x128xf32>
    %cst = arith.constant dense<0.000000e+00> : vector<8xf32>
    %4 = vector.multi_reduction <add>, %3, %cst [1] : vector<8x128xf32> to vector<8xf32>
    %5 = vector.shape_cast %4 : vector<8xf32> to vector<8x1xf32>
    %6 = arith.mulf %0, %0 : vector<8x128xf32>
    %cst_5 = arith.constant dense<0.000000e+00> : vector<8xf32>
    %7 = vector.multi_reduction <add>, %6, %cst_5 [1] : vector<8x128xf32> to vector<8xf32>
    %8 = vector.shape_cast %7 : vector<8xf32> to vector<8x1xf32>
    %9 = arith.mulf %1, %1 : vector<8x128xf32>
    %cst_6 = arith.constant dense<0.000000e+00> : vector<8xf32>
    %10 = vector.multi_reduction <add>, %9, %cst_6 [1] : vector<8x128xf32> to vector<8xf32>
    %11 = vector.shape_cast %10 : vector<8xf32> to vector<8x1xf32>
    %12 = arith.mulf %8, %11 : vector<8x1xf32>
    %cst_7 = arith.constant 1.000000e-16 : f32
    %13 = vector.broadcast %cst_7 : f32 to vector<8x1xf32>
    %14 = arith.maximumf %12, %13 : vector<8x1xf32>
    %15 = math.rsqrt %14 : vector<8x1xf32>
    %16 = arith.mulf %5, %15 : vector<8x1xf32>
    %cst_8 = arith.constant 1.000000e+00 : f32
    %17 = vector.broadcast %cst_8 : f32 to vector<8x1xf32>
    %18 = arith.subf %17, %16 : vector<8x1xf32>
    %cst_9 = arith.constant 1.000000e+00 : f32
    %19 = vector.broadcast %cst_9 : f32 to vector<8x1xf32>
    %20 = arith.subf %19, %2 : vector<8x1xf32>
    %21 = arith.mulf %20, %18 : vector<8x1xf32>
    %22 = arith.mulf %21, %18 : vector<8x1xf32>
    %cst_10 = arith.constant 1.000000e+00 : f32
    %23 = vector.broadcast %cst_10 : f32 to vector<8x1xf32>
    %24 = arith.subf %23, %18 : vector<8x1xf32>
    %cst_11 = arith.constant 0.000000e+00 : f32
    %25 = vector.broadcast %cst_11 : f32 to vector<8x1xf32>
    %26 = arith.maximumf %24, %25 : vector<8x1xf32>
    %cst_12 = arith.constant 3.000000e+00 : f32
    %27 = vector.broadcast %cst_12 : f32 to vector<8x1xf32>
    %28 = arith.mulf %27, %2 : vector<8x1xf32>
    %29 = arith.mulf %28, %26 : vector<8x1xf32>
    %30 = arith.mulf %29, %26 : vector<8x1xf32>
    %31 = arith.addf %22, %30 : vector<8x1xf32>
    %c8_i32 = arith.constant 8 : i32
    %32 = arith.muli %arg0, %c8_i32 : i32
    %33 = tpu.iota {dimensions = array<i32: 0>} : vector<8x1xi32>
    %34 = vector.broadcast %32 : i32 to vector<8x1xi32>
    %35 = arith.addi %34, %33 : vector<8x1xi32>
    %c6_i32 = arith.constant 6 : i32
    %36 = vector.broadcast %c6_i32 : i32 to vector<8x1xi32>
    %37 = arith.cmpi slt, %35, %36 : vector<8x1xi32>
    %cst_13 = arith.constant 0.000000e+00 : f32
    %38 = vector.broadcast %cst_13 : f32 to vector<8x1xf32>
    %39 = arith.select %37, %31, %38 : vector<8x1xi1>, vector<8x1xf32>
    %40 = vector.shape_cast %39 : vector<8x1xf32> to vector<1x8x1xf32>
    %cst_14 = arith.constant dense<0.000000e+00> : vector<1xf32>
    %41 = vector.multi_reduction <add>, %40, %cst_14 [1, 2] : vector<1x8x1xf32> to vector<1xf32>
    %42 = vector.shape_cast %41 : vector<1xf32> to vector<1x1x1xf32>
    %43 = vector.extract %42[0, 0, 0] : f32 from vector<1x1x1xf32>
    %44 = vector.broadcast %43 : f32 to vector<8x128xf32>
    %c0_15 = arith.constant 0 : index
    %c0_16 = arith.constant 0 : index
    %45 = vector.load %arg4[%c0_15, %c0_16] : memref<8x128xf32, #tpu.memory_space<vmem>>, vector<8x128xf32>
    tpu.vector_store %arg4[%c0_15, %c0_16], %44 {strides = array<i32>} : memref<8x128xf32, #tpu.memory_space<vmem>>, vector<8x128xf32>,
    return
  }
  func.func @transform_0(%arg0: i32) -> (i32, i32) {
    %c0_i32 = arith.constant 0 : i32
    %c0_i32_0 = arith.constant 0 : i32
    return %arg0, %c0_i32 : i32, i32
  }
  func.func @transform_1(%arg0: i32) -> (i32, i32) {
    %c0_i32 = arith.constant 0 : i32
    %c0_i32_0 = arith.constant 0 : i32
    return %arg0, %c0_i32 : i32, i32
  }
  func.func @transform_2(%arg0: i32) -> (i32, i32) {
    %c0_i32 = arith.constant 0 : i32
    %c0_i32_0 = arith.constant 0 : i32
    return %arg0, %c0_i32 : i32, i32
  }
  func.func @transform_3(%arg0: i32) -> (i32, i32) {
    %c0_i32 = arith.constant 0 : i32
    %c0_i32_0 = arith.constant 0 : i32
    return %arg0, %c0_i32 : i32, i32
  }
}

</mosaic_0001>

<bundles_post_ra>
// kernel: tpu_custom_call.1
= control target key start
LH: loop header
LB: loop body
LE: loop exit
PB: predicated region body
PF: predicated region fallthrough
CT: control target
= control target key end

     0   :  { %8 = vsyncpa [#allocation3], 0  ;;  %s193_s0 = inlined_call_operand.vmem [shape: f32[8,128], index: 0, kind: input, shape index: {}]   ;;  %s194_s1 = inlined_call_operand.hbm [shape: f32[8,128], index: 1, kind: input, shape index: {}]   ;;  %s195_s2 = inlined_call_operand.vmem [shape: f32[8,1], index: 2, kind: input, shape index: {}]   ;;  %s196_s3 = inlined_call_operand.hbm [shape: f32[8,128], index: 3, kind: output, shape index: {}]  }
   0x1   :  { %9 = vsyncpa [#allocation4], 0  ;;  %s17_s14 = sshll.u32 %s194_s1, 4  ;;  %s159_s15 = smov [#allocation2]   ;;  %s18_s14 = int_to_ptr.hbm [resolvable:$true] %s17_s14 }
   0x2   :  { %s19_s16 = sshll.u32 %s159_s15, 4  ;;  %s20_s16 = int_to_ptr.vmem [resolvable:$true] %s19_s16 }
   0x3   :  { %22 = dma.hbm_to_vmem [thread:$0]  %s18_s14, 128, %s20_s16, [#allocation3]  }
   0x4   :  { %155 = dma.done.wait [#allocation3], 128  }
   0x5   :  { %156 = vsyncadd [#allocation3], 4294967168  ;;  %v29_v0 = vld [vmem:[%s193_s0] sm:$0xff]  ;;  %v65_v21 = vlaneseq  ;;  %vm71_vm4 = vcmask 7168   ;;  %s91_s22 = sshll.u32 %s196_s3, 4  ;;  %s92_s22 = int_to_ptr.hbm [resolvable:$true] %s91_s22 }
   0x6   :  { %v30_v1 = vld [vmem:[#allocation2] sm:$0xff]  ;;  %v35_v2 = vmul.f32 %v29_v0, %v29_v0 }
   0x7   :  { %v32_v3 = vmul.f32 %v30_v1, %v29_v0  ;;  %v38_v4 = vmul.f32 %v30_v1, %v30_v1  ;;  %v31_v16 = vld [vmem:[%s195_s2] sm:$0xff]  ;;  %v66_v26 = vshrl.u32 %v65_v21, 7  ;;  %s160_s2 = smov [#allocation5]  }
   0x8   :  { %36 = vadd.xlane.f32.xlu0 %v35_v2  ;;  %v55_v19 = vsub.f32 1.0, %v31_v16  ;;  %v60_v23 = vmul.f32 3.0, %v31_v16  ;;  %s89_s19 = sshll.u32 %s160_s2, 4  ;;  %s90_s19 = int_to_ptr.vmem [resolvable:$true] %s89_s19 }
   0x9   :  { %33 = vadd.xlane.f32.xlu1 %v32_v3  ;;  %vm69_vm3 = vcmp.lt.s32.totalorder %v66_v26, 6 }
  0x10   :  { %39 = vadd.xlane.f32.xlu0 %v38_v4 }
  0x7b   :  { %v37_v5 = vpop.xlane.xlu0 %36 }
  0x7c   :  { %v34_v15 = vpop.xlane.xlu1 %33 }
  0x83   :  { %v40_v6 = vpop.xlane.xlu0 %39 }
  0x84   :  { %v41_v7 = vmul.f32 %v40_v6, %v37_v5 }
  0x86   :  { %v42_v8 = vmax.f32 %v41_v7, 1e-16 }
  0x88   :  { %105 = vrsqrt.f32 %v42_v8  ;;  %vm49_vm1 = vweird.f32 %v42_v8 }
  0x8e   :  { %v106_v9 = vpop.eup %105 }
  0x8f   :  { %v44_v10 = vmul.f32 %v106_v9, %v42_v8  ;;  %vm50_vm0 = vweird.f32 %v106_v9 }
  0x90   :  { %vm51_vm2 = vmor %vm49_vm1, %vm50_vm0 }
  0x91   :  { %v45_v11 = vmul.f32 %v106_v9, %v44_v10 }
  0x93   :  { %v46_v12 = vmul.f32 0.5, %v45_v11 }
  0x95   :  { %v47_v13 = vsub.f32 1.5, %v46_v12 }
  0x97   :  { %v48_v14 = vmul.f32 %v106_v9, %v47_v13 }
  0x99   :  { %v52_v17 = vsel %vm51_vm2, %v106_v9, %v48_v14 }
  0x9a   :  { %v53_v18 = vmul.f32 %v52_v17, %v34_v15 }
  0x9c   :  { %v54_v20 = vsub.f32 1.0, %v53_v18 }
  0x9e   :  { %v58_v22 = vsub.f32 1.0, %v54_v20  ;;  %v56_v24 = vmul.f32 %v55_v19, %v54_v20 }
  0xa0   :  { %v59_v25 = vmax.f32 %v58_v22, 0.0  ;;  %v57_v28 = vmul.f32 %v56_v24, %v54_v20 }
  0xa2   :  { %v61_v27 = vmul.f32 %v60_v23, %v59_v25 }
  0xa4   :  { %v62_v29 = vmul.f32 %v61_v27, %v59_v25 }
  0xa6   :  { %v63_v30 = vadd.f32 %v62_v29, %v57_v28 }
  0xa8   :  { %v70_v31 = vsel %vm69_vm3, %v63_v30, 0.0 }
  0xa9   :  { %v72_v32 = vsel %vm71_vm4, %v70_v31, 0.0 }
  0xaa   :  { %73 = vadd.xlane.f32.xlu1 %v72_v32 }
 0x11d   :  { %v74_v33 = vpop.xlane.xlu1 %73 }
 0x11e   :  { %v75_v34 = vrot.slane %v74_v33, 4 }
 0x120   :  { %v76_v35 = vadd.f32 %v75_v34, %v74_v33 }
 0x122   :  { %v77_v36 = vrot.slane %v76_v35, 2 }
 0x124   :  { %v78_v37 = vadd.f32 %v77_v36, %v76_v35 }
 0x126   :  { %v79_v38 = vrot.slane %v78_v37, 1 }
 0x128   :  { %v80_v39 = vadd.f32 %v79_v38, %v78_v37 }
 0x12a   :  { %101 = vpush %v80_v39 }
 0x15b   :  { %s102_s23 = spop %101 }
 0x15c   :  { %v82_v40 = vstv %s102_s23 }
 0x15d   :  { %83 = vst [vmem:[#allocation5] sm:$0xff] %v82_v40 }
 0x15e   :  { %94 = dma.vmem_to_hbm [thread:$0]  %s90_s19, 128, %s92_s22, [#allocation4]  }
 0x15f   :  { %157 = dma.done.wait [#allocation4], 128  }
 0x160   :  { %158 = vsyncadd [#allocation4], 4294967168 }
 0x161   :  { %99 = vsyncpa [#allocation3], 1 }
 0x162   :  { %100 = vsyncpa [#allocation4], 1 }

</bundles_post_ra>
